<compile_context>
chip_gen: v5e
topology: v5e:2x2
jax: 0.10.0
libtpu: 0.0.40
codegen_flags: <defaults>
</compile_context>

<pallas_src>
import math

import numpy as np
import jax
import jax.numpy as jnp
from jax.experimental import pallas as pl
from jax.experimental.pallas import tpu as pltpu


def _embed_kernel(x_ref, sel_ref, div_ref, off_ref, o_ref):
    """o[r, c*D + f] = sin(x[r, c] * div[f] + off[f])   (off: 0 -> sin, pi/2 -> cos).

    x_ref:   (TR, Cb)     f32 row tile of one column group
    sel_ref: (Cb, Cb*D)   f32 0/1 block-diagonal lane-expansion matrix
    div_ref: (1, Cb*D)    f32 tiled [div_term, div_term]
    off_ref: (1, Cb*D)    f32 0.0 on sin lanes, pi/2 on cos lanes
    o_ref:   (TR, Cb*D)   lane-dense flattened output tile
    """
    # Lane expansion on the (otherwise idle) MXU: x_rep[r, c*D + f] = x[r, c].
    # sel is exactly 0/1, so HIGHEST precision makes this bit-exact.
    x_rep = jnp.dot(
        x_ref[...], sel_ref[...],
        precision=jax.lax.Precision.HIGHEST,
        preferred_element_type=jnp.float32,
    )
    # Single transcendental per output element (cos(x) == sin(x + pi/2)).
    o_ref[...] = jnp.sin(x_rep * div_ref[...] + off_ref[...]).astype(o_ref.dtype)


def _choose_col_block(C, d_model, col_block):
    """Pick the per-grid-step column group size cb."""
    if col_block is not None:
        return max(1, min(int(col_block), C))
    LANE_CAP = 4096                    # lanes per output block
    SEL_CAP = 2 * 1024 * 1024          # bytes for the block-diagonal sel matrix
    cap = max(1, min(LANE_CAP // d_model, math.isqrt(SEL_CAP // (4 * d_model))))
    if C <= cap:
        return C                       # single group, free reshape of x
    # Prefer a divisor of C whose block lane width is a multiple of 128
    # (no column padding, unmasked stores on every output block).
    for cb in range(cap, 0, -1):
        if C % cb == 0 and (cb * d_model) % 128 == 0:
            return cb
    align = max(1, 128 // math.gcd(d_model, 128))
    cb = (cap // align) * align
    return cb if cb >= 1 else cap


def learn_embedding(x, factor, d_model, *, block_rows=None, col_block=None,
                    out_dtype=jnp.float32, out_block_bytes=6 * 1024 * 1024):
    """Pallas implementation of learnEmbedding.forward.

    x: (B, T) or (B, V, Z) float array
    factor: scalar parameter (shape (1,) like torch.randn(1))
    returns: (B, T, d_model) or (B, V, Z, d_model), dtype out_dtype
    """
    assert d_model % 2 == 0 and d_model >= 2, "d_model must be even"

    x = jnp.asarray(x, jnp.float32)
    orig_shape = x.shape
    x2 = x.reshape(-1, orig_shape[-1])          # collapse leading dims -> rows
    R, C = x2.shape
    half = d_model // 2

    cb = _choose_col_block(C, d_model, col_block)
    G = pl.cdiv(C, cb)                          # number of column groups
    c_pad = G * cb
    lane_blk = cb * d_model                     # output lane width per block

    # --- constants, computed once outside the kernel -------------------------
    factor = jnp.asarray(factor, jnp.float32).reshape(())
    div_term = jnp.exp(jnp.arange(0, d_model, 2, dtype=jnp.float32) * factor)  # (half,)
    div_full = jnp.concatenate([div_term, div_term])                           # (d_model,)
    off_full = jnp.concatenate([jnp.zeros((half,), jnp.float32),
                                jnp.full((half,), math.pi / 2, jnp.float32)])  # (d_model,)
    div_row = jnp.tile(div_full, cb).reshape(1, lane_blk)                      # (1, Cb*D)
    off_row = jnp.tile(off_full, cb).reshape(1, lane_blk)                      # (1, Cb*D)
    # 0/1 block-diagonal expansion matrix: sel[c', c*D + f] = 1 iff c' == c.
    sel = jnp.repeat(jnp.eye(cb, dtype=jnp.float32), d_model, axis=1)          # (Cb, Cb*D)

    # --- x layout: (G, rows, cb) ---------------------------------------------
    # G == 1: free reshape. G > 1: one small transpose of the (R, C) input;
    # padded columns are explicit zeros so the matmul never mixes garbage
    # into in-range lanes.
    if G == 1:
        x3 = x2.reshape(1, R, C)
    else:
        if c_pad != C:
            x2 = jnp.pad(x2, ((0, 0), (0, c_pad - C)))
        x3 = x2.reshape(R, G, cb).transpose(1, 0, 2)

    # --- row tiling -----------------------------------------------------------
    itemsize = np.dtype(out_dtype).itemsize
    if block_rows is not None:
        cap_rows = max(1, int(block_rows))
    else:
        cap_rows = max(8, (out_block_bytes // (lane_blk * itemsize)) // 8 * 8)
    if cap_rows >= R:
        tr = R                                   # single row block (exact extent)
    else:
        tr = max(8, (cap_rows // 8) * 8)         # multiple of 8 sublanes
    n_row = pl.cdiv(R, tr)                       # ragged final block handled by Pallas

    out_flat = pl.pallas_call(
        _embed_kernel,
        out_shape=jax.ShapeDtypeStruct((R, C * d_model), out_dtype),
        grid=(n_row, G),
        in_specs=[
            pl.BlockSpec((None, tr, cb), lambda i, g: (g, i, 0)),   # x row tile of group g
            pl.BlockSpec((cb, lane_blk), lambda i, g: (0, 0)),      # sel (constant block)
            pl.BlockSpec((1, lane_blk), lambda i, g: (0, 0)),       # div row (constant)
            pl.BlockSpec((1, lane_blk), lambda i, g: (0, 0)),       # sin/cos offset row
        ],
        out_specs=pl.BlockSpec((tr, lane_blk), lambda i, g: (i, g)),
        compiler_params=pltpu.CompilerParams(
            dimension_semantics=("parallel", "parallel"),
            vmem_limit_bytes=32 * 1024 * 1024),
    )(x3, sel, div_row, off_row)

    return out_flat.reshape(*orig_shape, d_model)


def _reference(x, factor, d_model):
    x = jnp.asarray(x, jnp.float32)
    div_term = jnp.exp(jnp.arange(0, d_model, 2, dtype=jnp.float32)
                       * jnp.asarray(factor, jnp.float32).reshape(()))
    phase = x[..., None] * div_term
    return jnp.concatenate([jnp.sin(phase), jnp.cos(phase)], axis=-1)


if __name__ == "__main__":
    key = jax.random.PRNGKey(0)
    k_factor, k1, k2, k3, k4 = jax.random.split(key, 5)

    d_model = 32
    # parameter: torch.randn(1)-style init, scaled so div_term / phases stay in
    # a numerically sane range (as a trained STPN factor would be).
    factor = jax.random.normal(k_factor, (1,), dtype=jnp.float32) * 0.05

    def check(x, out, atol=1e-4):
        # atol=1e-4 covers the ulp-level argument rounding of cos(x)=sin(x+pi/2).
        ref = _reference(x, factor, d_model)
        assert out.shape == ref.shape, (out.shape, ref.shape)
        err = float(jnp.max(jnp.abs(out.astype(jnp.float32) - ref)))
        assert jnp.allclose(out.astype(jnp.float32), ref, atol=atol, rtol=1e-5), err

    # 2-D branch: x of shape (B, T)
    x2d = jax.random.normal(k1, (2, 8), dtype=jnp.float32)
    check(x2d, jax.block_until_ready(learn_embedding(x2d, factor, d_model)))

    # 3-D branch: x of shape (B, V, Z), single row tile / single column group
    x3d = jax.random.normal(k2, (2, 4, 8), dtype=jnp.float32)
    check(x3d, jax.block_until_ready(learn_embedding(x3d, factor, d_model)))

    # ragged final row tile: R=10, block_rows=8 -> 2 grid steps, no pad/[:R] copies
    x3g = jax.random.normal(k3, (2, 5, 8), dtype=jnp.float32)
    check(x3g, jax.block_until_ready(learn_embedding(x3g, factor, d_model, block_rows=8)))

    # column-group path: C=16, col_block=8 -> grid (rows, 2), shared block-diag sel
    x3c = jax.random.normal(k4, (2, 2, 16), dtype=jnp.float32)
    check(x3c, jax.block_until_ready(learn_embedding(x3c, factor, d_model, col_block=8)))

    print("KERNEL_OK")
</pallas_src>

<mosaic_0001>
module attributes {stable_mosaic.version = 11 : i64} {
  func.func @_embed_kernel(%arg0: i32, %arg1: i32, %arg2: memref<1x2x8xf32, #tpu.memory_space<vmem>>, %arg3: memref<8x256xf32, #tpu.memory_space<vmem>>, %arg4: memref<1x256xf32, #tpu.memory_space<vmem>>, %arg5: memref<1x256xf32, #tpu.memory_space<vmem>>, %arg6: memref<2x256xf32, #tpu.memory_space<vmem>>) attributes {dimension_semantics = [#tpu.dimension_semantics<parallel>, #tpu.dimension_semantics<parallel>], iteration_bounds = array<i64: 1, 1>, scalar_prefetch = 0 : i64, scratch_operands = 0 : i64, tpu.core_type = #tpu.core_type<tc>, window_params = [{transform_indices = @transform_0, window_bounds = array<i64: 1, 2, 8>}, {pipeline_mode = #tpu.pipeline_mode<synchronous>, transform_indices = @transform_1, window_bounds = array<i64: 8, 256>}, {pipeline_mode = #tpu.pipeline_mode<synchronous>, transform_indices = @transform_2, window_bounds = array<i64: 1, 256>}, {pipeline_mode = #tpu.pipeline_mode<synchronous>, transform_indices = @transform_3, window_bounds = array<i64: 1, 256>}, {transform_indices = @transform_4, window_bounds = array<i64: 2, 256>}]} {
    %c0 = arith.constant 0 : index
    %c0_0 = arith.constant 0 : index
    %c0_1 = arith.constant 0 : index
    %0 = vector.load %arg2[%c0, %c0_0, %c0_1] : memref<1x2x8xf32, #tpu.memory_space<vmem>>, vector<1x2x8xf32>
    %1 = vector.shape_cast %0 : vector<1x2x8xf32> to vector<2x8xf32>
    %c0_2 = arith.constant 0 : index
    %c0_3 = arith.constant 0 : index
    %2 = vector.load %arg3[%c0_2, %c0_3] : memref<8x256xf32, #tpu.memory_space<vmem>>, vector<8x256xf32>
    %cst = arith.constant dense<0.000000e+00> : vector<2x256xf32>
    %3 = tpu.matmul %1, %2, %cst {dimension_numbers = #tpu.dot_dimension_numbers<[1], [0], [0], [1], [0, 0, 1, 1], [], []>, precision = #tpu.contract_precision<fp32>} : vector<2x8xf32>, vector<8x256xf32>, vector<2x256xf32> -> vector<2x256xf32>
    %c0_4 = arith.constant 0 : index
    %c0_5 = arith.constant 0 : index
    %4 = vector.load %arg4[%c0_4, %c0_5] : memref<1x256xf32, #tpu.memory_space<vmem>>, vector<1x256xf32>
    %5 = vector.broadcast %4 : vector<1x256xf32> to vector<2x256xf32>
    %6 = arith.mulf %3, %5 : vector<2x256xf32>
    %c0_6 = arith.constant 0 : index
    %c0_7 = arith.constant 0 : index
    %7 = vector.load %arg5[%c0_6, %c0_7] : memref<1x256xf32, #tpu.memory_space<vmem>>, vector<1x256xf32>
    %8 = vector.broadcast %7 : vector<1x256xf32> to vector<2x256xf32>
    %9 = arith.addf %6, %8 : vector<2x256xf32>
    %10 = math.sin %9 : vector<2x256xf32>
    %c0_8 = arith.constant 0 : index
    %c0_9 = arith.constant 0 : index
    %11 = vector.load %arg6[%c0_8, %c0_9] : memref<2x256xf32, #tpu.memory_space<vmem>>, vector<2x256xf32>
    tpu.vector_store %arg6[%c0_8, %c0_9], %10 {strides = array<i32>} : memref<2x256xf32, #tpu.memory_space<vmem>>, vector<2x256xf32>,
    return
  }
  func.func @transform_0(%arg0: i32, %arg1: i32) -> (i32, i32, i32) {
    %c0_i32 = arith.constant 0 : i32
    %c0_i32_0 = arith.constant 0 : i32
    return %arg1, %arg0, %c0_i32 : i32, i32, i32
  }
  func.func @transform_1(%arg0: i32, %arg1: i32) -> (i32, i32) {
    %c0_i32 = arith.constant 0 : i32
    %c0_i32_0 = arith.constant 0 : i32
    %c0_i32_1 = arith.constant 0 : i32
    return %c0_i32, %c0_i32_0 : i32, i32
  }
  func.func @transform_2(%arg0: i32, %arg1: i32) -> (i32, i32) {
    %c0_i32 = arith.constant 0 : i32
    %c0_i32_0 = arith.constant 0 : i32
    %c0_i32_1 = arith.constant 0 : i32
    return %c0_i32, %c0_i32_0 : i32, i32
  }
  func.func @transform_3(%arg0: i32, %arg1: i32) -> (i32, i32) {
    %c0_i32 = arith.constant 0 : i32
    %c0_i32_0 = arith.constant 0 : i32
    %c0_i32_1 = arith.constant 0 : i32
    return %c0_i32, %c0_i32_0 : i32, i32
  }
  func.func @transform_4(%arg0: i32, %arg1: i32) -> (i32, i32) {
    %c0_i32 = arith.constant 0 : i32
    return %arg0, %arg1 : i32, i32
  }
}

</mosaic_0001>

<bundles_post_ra>
// kernel: tpu_custom_call.1
= control target key start
LH: loop header
LB: loop body
LE: loop exit
PB: predicated region body
PF: predicated region fallthrough
CT: control target
= control target key end

     0   :  { %9 = vsyncpa [#allocation3], 0  ;;  %s1072_s0 = inlined_call_operand.hbm [shape: f32[1,2,8], index: 0, kind: input, shape index: {}]   ;;  %s1073_s1 = inlined_call_operand.hbm [shape: f32[8,256], index: 1, kind: input, shape index: {}]   ;;  %s1074_s2 = inlined_call_operand.hbm [shape: f32[1,256], index: 2, kind: input, shape index: {}]   ;;  %s1075_s3 = inlined_call_operand.vmem [shape: f32[1,256], index: 3, kind: input, shape index: {}]   ;;  %s1076_s4 = inlined_call_operand.hbm [shape: f32[2,256], index: 4, kind: output, shape index: {}]  }
   0x1   :  { %10 = vsyncpa [#allocation6], 0  ;;  %s28_s17 = sshll.u32 %s1073_s1, 4  ;;  %s29_s17 = int_to_ptr.hbm [resolvable:$true] %s28_s17 }
   0x2   :  { %11 = vsyncpa [#allocation4], 0  ;;  %s828_s18 = smov [#allocation5]   ;;  %s17_s22 = sshll.u32 %s1072_s0, 4  ;;  %s18_s22 = int_to_ptr.hbm [resolvable:$true] %s17_s22 }
   0x3   :  { %s30_s19 = sshll.u32 %s828_s18, 4  ;;  %s829_s23 = smov [#allocation2]   ;;  %s31_s19 = int_to_ptr.vmem [resolvable:$true] %s30_s19 }
   0x4   :  { %33 = dma.hbm_to_vmem [thread:$0]  %s29_s17, 256, %s31_s19, [#allocation6]  }
   0x5   :  { %s19_s24 = sshll.u32 %s829_s23, 4  ;;  %s39_s27 = sshll.u32 %s1074_s2, 4  ;;  %s20_s24 = int_to_ptr.vmem [resolvable:$true] %s19_s24  ;;  %s40_s27 = int_to_ptr.hbm [resolvable:$true] %s39_s27 }
   0x6   :  { %22 = dma.hbm_to_vmem [thread:$0]  %s18_s22, 32, %s20_s24, [#allocation3]  }
   0x7   :  { %s830_s1 = smov [#allocation7]  }
   0x8   :  { %s41_s28 = sshll.u32 %s830_s1, 4  ;;  %s42_s28 = int_to_ptr.vmem [resolvable:$true] %s41_s28 }
   0x9   :  { %44 = dma.hbm_to_vmem [thread:$0]  %s40_s27, 32, %s42_s28, [#allocation6]  }
   0xa   :  { %822 = dma.done.wait [#allocation3], 32  }
   0xb   :  { %823 = vsyncadd [#allocation3], 4294967264 }
   0xc   :  { %824 = dma.done.wait [#allocation6], 288  }
   0xd   :  { %825 = vsyncadd [#allocation6], 4294967008  ;;  %vm62_vm0 = vcmask 64512   ;;  %v60_v0 = vld [vmem:[#allocation5] sm:$0xff]  ;;  %v59_v1 = vld [vmem:[#allocation2] sm:$0x3] }
   0xe   :  { %v61_v2 = vld [vmem:[#allocation5 + $0x8] sm:$0xff]  ;;  %v81_v3 = vand.u32 4294901760, %v60_v0  ;;  %v64_v4 = vsel %vm62_vm0, %v59_v1, 0  ;;  %v358_v25 = vld [vmem:[#allocation7] sm:$0x3]  ;;  %s698_s6 = sshll.u32 %s1076_s4, 4  ;;  %s699_s6 = int_to_ptr.hbm [resolvable:$true] %s698_s6 }
   0xf   :  { %v227_v5 = vand.u32 4294901760, %v61_v2  ;;  %v83_v6 = vand.u32 4294901760, %v64_v4  ;;  %v366_v29 = vld [vmem:[%s1075_s3] sm:$0x3]  ;;  %v360_v31 = vperm.slane %v358_v25, 0  ;;  %v361_v50 = vperm.slane %v358_v25, 1 }
  0x10   :  { %v108_v7 = vsub.f32 %v60_v0, %v81_v3  ;;  %158 = vmatpush.msra.mxu3 %v81_v3  ;;  %82 = vmatpush.msra.mxu0 %v81_v3  ;;  %v368_v34 = vperm.slane %v366_v29, 0  ;;  %v369_v56 = vperm.slane %v366_v29, 1  ;;  %v831_v61 = vmov 683565275   ;;  %s838_s3 = smov [#allocation8]  }
  0x11   :  { %v254_v8 = vsub.f32 %v61_v2, %v227_v5  ;;  %v84_v9 = vsub.f32 %v64_v4, %v83_v6  ;;  %v832_v63 = vmov 2475754826   ;;  %s696_s29 = sshll.u32 %s838_s3, 4  ;;  %s697_s29 = int_to_ptr.vmem [resolvable:$true] %s696_s29 }
  0x12   :  { %135 = vmatpush.msra.mxu2 %v108_v7  ;;  %v109_v10 = vand.u32 4294901760, %v108_v7 }
  0x13   :  { %v255_v11 = vand.u32 4294901760, %v254_v8  ;;  %138 = vmatmul.f32.vlgmr.msra.gmra.mxu2 %v84_v9  ;;  %v85_v12 = vand.u32 4294901760, %v84_v9 }
  0x14   :  { %228 = vmatpush.msrb.mxu2 %v227_v5  ;;  %v110_v13 = vsub.f32 %v108_v7, %v109_v10  ;;  %184 = vmatpush.msrb.mxu0 %v109_v10 }
  0x15   :  { %v256_v14 = vsub.f32 %v254_v8, %v255_v11  ;;  %162 = vmatmul.f32.vlgmr.msra.gmra.mxu3 %v85_v12  ;;  %v86_v15 = vsub.f32 %v84_v9, %v85_v12 }
  0x16   :  { %330 = vmatpush.msra.mxu2 %v255_v11  ;;  %v111_v16 = vand.u32 4294901760, %v110_v13 }
  0x17   :  { %v257_v17 = vand.u32 4294901760, %v256_v14  ;;  %v87_v18 = vand.u32 4294901760, %v86_v15 }
  0x18   :  { %112 = vmatpush.msra.mxu1 %v111_v16 }
  0x19   :  { %258 = vmatpush.msrb.mxu3 %v257_v17  ;;  %88 = vmatmul.f32.vlgmr.msra.gmra.mxu0 %v87_v18 }
  0x1a   :  { %114 = vmatmul.f32.vlgmr.msra.gmra.mxu1 %v83_v6  ;;  %281 = vmatpush.msra.mxu0 %v254_v8 }
  0x1b   :  { %206 = vmatpush.msrb.mxu1 %v81_v3  ;;  %234 = vmatmul.f32.vlgmr.msrb.gmra.mxu2 %v87_v18  ;;  %v833_v3 = vmov 2131351028  }
  0x1c   :  { %352 = vmatpush.msra.mxu3 %v227_v5 }
  0x1d   :  { %304 = vmatpush.msra.mxu1 %v227_v5  ;;  %260 = vmatmul.f32.vlgmr.msrb.gmra.mxu3 %v83_v6 }
  0x21   :  { %186 = vmatmul.f32.vlgmr.msrb.gmra.mxu0 %v83_v6 }
  0x22   :  { %208 = vmatmul.f32.vlgmr.msrb.gmra.mxu1 %v83_v6 }
  0x23   :  { %332 = vmatmul.f32.vlgmr.msra.gmra.mxu2 %v83_v6 }
  0x25   :  { %354 = vmatmul.f32.vlgmr.msra.gmra.mxu3 %v83_v6  ;;  %v834_v6 = vmov 2102212464  }
  0x29   :  { %284 = vmatmul.f32.vlgmr.msra.gmra.mxu0 %v84_v9  ;;  %v835_v9 = vmov 920167782  }
  0x2a   :  { %308 = vmatmul.f32.vlgmr.msra.gmra.mxu1 %v85_v12  ;;  %v836_v12 = vmov 1326507024  }
  0x96   :  { %v89_v19 = vpop.f32.mrf.mxu0  ;;  %v139_v22 = vpop.f32.mrf.mxu2 }
  0x97   :  { %v115_v20 = vpop.f32.mrf.mxu1 }
  0x98   :  { %v116_v21 = vadd.f32 %v115_v20, %v89_v19  ;;  %v163_v23 = vpop.f32.mrf.mxu3 }
  0x9a   :  { %v140_v24 = vadd.f32 %v139_v22, %v116_v21 }
  0x9c   :  { %v164_v26 = vadd.f32 %v163_v23, %v140_v24 }
  0x9e   :  { %v187_v27 = vpop.f32.mrf.mxu0  ;;  %v235_v32 = vpop.f32.mrf.mxu2 }
  0x9f   :  { %v209_v28 = vpop.f32.mrf.mxu1  ;;  %v188_v30 = vadd.f32 %v187_v27, %v164_v26 }
  0xa0   :  { %v261_v35 = vpop.f32.mrf.mxu3 }
  0xa1   :  { %v210_v33 = vadd.f32 %v209_v28, %v188_v30  ;;  %v262_v38 = vadd.f32 %v261_v35, %v235_v32 }
  0xa3   :  { %v364_v36 = vmul.f32 %v360_v31, %v210_v33 }
  0xa5   :  { %v876_v37 = vadd.f32 %v368_v34, %v364_v36 }
  0xa6   :  { %v285_v39 = vpop.f32.mrf.mxu0  ;;  %v333_v43 = vpop.f32.mrf.mxu2 }
  0xa7   :  { %v309_v40 = vpop.f32.mrf.mxu1  ;;  %v377_v41 = vand.u32 2139095040, %v876_v37  ;;  %v286_v42 = vadd.f32 %v285_v39, %v262_v38  ;;  %v374_v47 = vand.u32 2147483647, %v876_v37 }
  0xa8   :  { %v355_v46 = vpop.f32.mrf.mxu3 }
  0xa9   :  { %v378_v44 = vshrl.u32 %v377_v41, 23  ;;  %v310_v45 = vadd.f32 %v309_v40, %v286_v42  ;;  %v381_v53 = vand.u32 8388607, %v374_v47 }
  0xab   :  { %v709_v48 = vadd.s32 4294967169, %v378_v44  ;;  %v334_v49 = vadd.f32 %v333_v43, %v310_v45  ;;  %v382_v58 = vor.u32 8388608, %v381_v53 }
  0xad   :  { %v384_v51 = vadd.s32 1, %v709_v48  ;;  %v356_v52 = vadd.f32 %v355_v46, %v334_v49  ;;  %v896_v17 = vshll.u32 %v382_v58, 8 }
  0xaf   :  { %vm385_vm1 = vcmp.gt.s32.totalorder %v384_v51, 0  ;;  %v365_v55 = vmul.f32 %v361_v50, %v356_v52  ;;  %v423_v30 = vand.u32 65535, %v896_v17  ;;  %v424_v36 = vshrl.u32 %v896_v17, 16 }
  0xb0   :  { %v386_v54 = vsel %vm385_vm1, %v384_v51, 0 }
  0xb1   :  { %v388_v57 = vand.u32 31, %v386_v54  ;;  %v882_v60 = vshrl.u32 %v386_v54, 5  ;;  %v886_v1 = vadd.f32 %v369_v56, %v365_v55 }
  0xb3   :  { %v389_v59 = vsub.s32 32, %v388_v57  ;;  %v391_v62 = vshll.u32 %v831_v61, %v388_v57  ;;  %v394_v0 = vshll.u32 %v832_v63, %v388_v57  ;;  %v397_v5 = vshll.u32 %v833_v3, %v388_v57 }
  0xb4   :  { %v400_v8 = vshll.u32 %v834_v6, %v388_v57  ;;  %v403_v11 = vshll.u32 %v835_v9, %v388_v57  ;;  %vm406_vm2 = vcmp.lt.s32.totalorder %v882_v60, 1  ;;  %v532_v20 = vand.u32 2139095040, %v886_v1 }
  0xb5   :  { %v392_v2 = vshrl.u32 %v832_v63, %v389_v59  ;;  %v395_v4 = vshrl.u32 %v833_v3, %v389_v59  ;;  %v398_v7 = vshrl.u32 %v834_v6, %v389_v59  ;;  %v401_v10 = vshrl.u32 %v835_v9, %v389_v59 }
  0xb6   :  { %v404_v13 = vshrl.u32 %v836_v12, %v389_v59  ;;  %vm409_vm3 = vcmp.lt.s32.totalorder %v882_v60, 4  ;;  %v529_v22 = vand.u32 2147483647, %v886_v1  ;;  %vm408_vm4 = vcmp.lt.s32.totalorder %v882_v60, 3 }
  0xb7   :  { %v393_v14 = vor.u32 %v392_v2, %v391_v62  ;;  %v396_v15 = vor.u32 %v395_v4, %v394_v0  ;;  %v399_v16 = vor.u32 %v398_v7, %v397_v5  ;;  %v402_v18 = vor.u32 %v401_v10, %v400_v8 }
  0xb8   :  { %v405_v19 = vor.u32 %v404_v13, %v403_v11  ;;  %vm407_vm5 = vcmp.lt.s32.totalorder %v882_v60, 2  ;;  %v533_v28 = vshrl.u32 %v532_v20, 23  ;;  %v536_v34 = vand.u32 8388607, %v529_v22 }
  0xb9   :  { %v418_v21 = vsel %vm406_vm2, %v396_v15, %v399_v16  ;;  %v414_v23 = vsel %vm406_vm2, %v393_v14, %v396_v15  ;;  %v415_v24 = vsel %vm409_vm3, %v402_v18, 920167782  ;;  %v390_v39 = vshrl.u32 %v831_v61, %v389_v59 }
  0xba   :  { %v419_v25 = vsel %vm409_vm3, %v405_v19, 1326507024  ;;  %v416_v26 = vsel %vm408_vm4, %v399_v16, %v415_v24  ;;  %v712_v35 = vadd.s32 4294967169, %v533_v28  ;;  %v411_v40 = vsel %vm409_vm3, %v399_v16, 2102212464 }
  0xbb   :  { %v420_v27 = vsel %vm408_vm4, %v402_v18, %v419_v25  ;;  %v417_v31 = vsel %vm407_vm5, %v414_v23, %v416_v26  ;;  %v537_v45 = vor.u32 8388608, %v536_v34  ;;  %v934_v49 = vsel %vm406_vm2, %v390_v39, %v393_v14 }
  0xbc   :  { %v421_v29 = vsel %vm407_vm5, %v418_v21, %v420_v27  ;;  %v448_v41 = vshrl.u32 %v417_v31, 16  ;;  %v539_v42 = vadd.s32 1, %v712_v35  ;;  %v447_v48 = vand.u32 65535, %v417_v31 }
  0xbd   :  { %v425_v32 = vand.u32 65535, %v421_v29  ;;  %v426_v33 = vshrl.u32 %v421_v29, 16  ;;  %v938_v52 = vsel %vm408_vm4, %v396_v15, %v411_v40  ;;  %v944_v57 = vshll.u32 %v537_v45, 8 }
  0xbe   :  { %vm540_vm6 = vcmp.gt.s32.totalorder %v539_v42, 0  ;;  %v940_v55 = vmul.u32 %v448_v41, %v423_v30  ;;  %v942_v56 = vmul.u32 %v448_v41, %v424_v36  ;;  %v449_v0 = vmul.u32 %v447_v48, %v423_v30 }
  0xbf   :  { %v924_v38 = vmul.u32 %v426_v33, %v423_v30  ;;  %v427_v43 = vmul.u32 %v425_v32, %v423_v30  ;;  %v930_v46 = vmul.u32 %v425_v32, %v424_v36  ;;  %v541_v51 = vsel %vm540_vm6, %v539_v42, 0 }
  0xc0   :  { %v430_v53 = vmul.u32 %v426_v33, %v424_v36  ;;  %v543_v54 = vand.u32 31, %v541_v51  ;;  %v947_v59 = vshrl.u32 %v541_v51, 5  ;;  %v949_v2 = vmul.u32 %v447_v48, %v424_v36 }
  0xc1   :  { %v431_v44 = vshll.u32 %v924_v38, 16  ;;  %v433_v58 = vshll.u32 %v930_v46, 16  ;;  %v837_v7 = vmov 0   ;;  %v578_v29 = vand.u32 65535, %v944_v57 }
  0xc2   :  { %v544_v62 = vsub.s32 32, %v543_v54  ;;  %v546_v4 = vshll.u32 %v831_v61, %v543_v54  ;;  %v549_v5 = vshll.u32 %v832_v63, %v543_v54  ;;  %v552_v14 = vshll.u32 %v833_v3, %v543_v54 }
  0xc3   :  { %v437_v50 = vadd.s32 %v431_v44, %v427_v43  ;;  %vm435_vm7 = vc.u32 %v427_v43, %v431_v44  ;;  %v555_v16 = vshll.u32 %v834_v6, %v543_v54  ;;  %v558_v19 = vshll.u32 %v835_v9, %v543_v54 }
  0xc4   :  { %v436_v8 = vsel %vm435_vm7, 1, %v837_v7  ;;  %v547_v11 = vshrl.u32 %v832_v63, %v544_v62  ;;  %v550_v13 = vshrl.u32 %v833_v3, %v544_v62  ;;  %v553_v15 = vshrl.u32 %v834_v6, %v544_v62 }
  0xc5   :  { %vm954_vm8 = vc.u32 %v437_v50, %v433_v58  ;;  %v556_v18 = vshrl.u32 %v835_v9, %v544_v62  ;;  %v559_v20 = vshrl.u32 %v836_v12, %v544_v62  ;;  %v453_v63 = vshll.u32 %v940_v55, 16 }
  0xc6   :  { %v966_v21 = vor.u32 %v547_v11, %v546_v4  ;;  %v968_v23 = vor.u32 %v550_v13, %v549_v5  ;;  %v554_v24 = vor.u32 %v553_v15, %v552_v14  ;;  %vm561_vm9 = vcmp.lt.s32.totalorder %v947_v59, 1 }
  0xc7   :  { %v557_v25 = vor.u32 %v556_v18, %v555_v16  ;;  %v560_v26 = vor.u32 %v559_v20, %v558_v19  ;;  %v438_v3 = vadd.s32 %v436_v8, %v430_v53  ;;  %vm564_vm10 = vcmp.lt.s32.totalorder %v947_v59, 4 }
  0xc8   :  { %v569_v6 = vsel %vm561_vm9, %v966_v21, %v968_v23  ;;  %v573_v9 = vsel %vm561_vm9, %v968_v23, %v554_v24  ;;  %v440_v12 = vsel %vm954_vm8, 1, %v837_v7  ;;  %vm563_vm11 = vcmp.lt.s32.totalorder %v947_v59, 3 }
  0xc9   :  { %v570_v27 = vsel %vm564_vm10, %v557_v25, 920167782  ;;  %v574_v28 = vsel %vm564_vm10, %v560_v26, 1326507024  ;;  %vm562_vm12 = vcmp.lt.s32.totalorder %v947_v59, 2  ;;  %v579_v32 = vshrl.u32 %v944_v57, 16 }
  0xca   :  { %v571_v30 = vsel %vm563_vm11, %v554_v24, %v570_v27  ;;  %v575_v31 = vsel %vm563_vm11, %v557_v25, %v574_v28  ;;  %v442_v35 = vadd.s32 %v440_v12, %v438_v3  ;;  %vm999_vm13 = vc.u32 %v449_v0, %v453_v63 }
  0xcb   :  { %v572_v33 = vsel %vm562_vm12, %v569_v6, %v571_v30  ;;  %v576_v34 = vsel %vm562_vm12, %v573_v9, %v575_v31  ;;  %v432_v43 = vshrl.u32 %v924_v38, 16  ;;  %v434_v44 = vshrl.u32 %v930_v46, 16 }
  0xcc   :  { %v580_v39 = vand.u32 65535, %v576_v34  ;;  %v581_v40 = vshrl.u32 %v576_v34, 16  ;;  %v602_v41 = vand.u32 65535, %v572_v33  ;;  %v603_v42 = vshrl.u32 %v572_v33, 16 }
  0xcd   :  { %v454_v45 = vshrl.u32 %v940_v55, 16  ;;  %v455_v48 = vshll.u32 %v949_v2, 16  ;;  %v545_v50 = vshrl.u32 %v831_v61, %v544_v62  ;;  %v459_v54 = vadd.s32 %v453_v63, %v449_v0 }
  0xce   :  { %v583_v51 = vmul.u32 %v581_v40, %v578_v29  ;;  %v584_v53 = vmul.u32 %v580_v39, %v579_v32  ;;  %v605_v58 = vmul.u32 %v603_v42, %v578_v29  ;;  %v606_v4 = vmul.u32 %v602_v41, %v579_v32 }
  0xcf   :  { %v443_v5 = vadd.s32 %v442_v35, %v432_v43  ;;  %v458_v8 = vsel %vm999_vm13, 1, %v837_v7  ;;  %v582_v10 = vmul.u32 %v580_v39, %v578_v29  ;;  %v585_v38 = vmul.u32 %v581_v40, %v579_v32 }
  0xd0   :  { %v586_v11 = vshll.u32 %v583_v51, 16  ;;  %v604_v46 = vmul.u32 %v602_v41, %v578_v29  ;;  %v588_v13 = vshll.u32 %v584_v53, 16  ;;  %v607_v55 = vmul.u32 %v603_v42, %v579_v32 }
  0xd1   :  { %v608_v14 = vshll.u32 %v605_v58, 16  ;;  %v610_v15 = vshll.u32 %v606_v4, 16  ;;  %v460_v62 = vadd.s32 %v458_v8, %v942_v56  ;;  %vm461_vm15 = vc.u32 %v459_v54, %v455_v48 }
  0xd2   :  { %vm590_vm14 = vc.u32 %v582_v10, %v586_v11  ;;  %v592_v61 = vadd.s32 %v586_v11, %v582_v10  ;;  %v462_v18 = vsel %vm461_vm15, 1, %v837_v7  ;;  %v456_v63 = vshrl.u32 %v949_v2, 16 }
  0xd3   :  { %v591_v0 = vsel %vm590_vm14, 1, %v837_v7  ;;  %vm612_vm0 = vc.u32 %v604_v46, %v608_v14  ;;  %v614_v16 = vadd.s32 %v608_v14, %v604_v46  ;;  %v566_v25 = vsel %vm564_vm10, %v554_v24, 2102212464 }
  0xd4   :  { %v593_v19 = vadd.s32 %v591_v0, %v585_v38  ;;  %vm594_vm1 = vc.u32 %v592_v61, %v588_v13  ;;  %v613_v20 = vsel %vm612_vm0, 1, %v837_v7  ;;  %v587_v56 = vshrl.u32 %v583_v51, 16 }
  0xd5   :  { %v595_v26 = vsel %vm594_vm1, 1, %v837_v7  ;;  %v615_v3 = vadd.s32 %v613_v20, %v607_v55  ;;  %vm616_vm2 = vc.u32 %v614_v16, %v610_v15  ;;  %v464_v12 = vadd.s32 %v462_v18, %v460_v62 }
  0xd6   :  { %v597_v6 = vadd.s32 %v595_v26, %v593_v19  ;;  %v617_v9 = vsel %vm616_vm2, 1, %v837_v7  ;;  %v565_v27 = vsel %vm561_vm9, %v545_v50, %v966_v21  ;;  %v609_v28 = vshrl.u32 %v605_v58, 16 }
  0xd7   :  { %v619_v29 = vadd.s32 %v617_v9, %v615_v3  ;;  %v444_v30 = vadd.s32 %v443_v5, %v434_v44  ;;  %v567_v2 = vsel %vm563_vm11, %v968_v23, %v566_v25  ;;  %v589_v24 = vshrl.u32 %v584_v53, 16 }
  0xd8   :  { %v598_v31 = vadd.s32 %v597_v6, %v587_v56  ;;  %v465_v32 = vadd.s32 %v464_v12, %v454_v45  ;;  %v611_v33 = vshrl.u32 %v606_v4, 16  ;;  %v463_v35 = vadd.s32 %v459_v54, %v455_v48 }
  0xd9   :  { %v620_v34 = vadd.s32 %v619_v29, %v609_v28  ;;  %v413_v7 = vsel %vm407_vm5, %v934_v49, %v938_v52  ;;  %v618_v21 = vadd.s32 %v614_v16, %v610_v15  ;;  %v568_v40 = vsel %vm562_vm12, %v565_v27, %v567_v2 }
  0xda   :  { %v599_v36 = vadd.s32 %v598_v31, %v589_v24  ;;  %v466_v39 = vadd.s32 %v465_v32, %v456_v63  ;;  %vm469_vm3 = vc.u32 %v444_v30, %v463_v35  ;;  %v467_v42 = vmul.u32 %v896_v17, %v413_v7 }
  0xdb   :  { %v621_v41 = vadd.s32 %v620_v34, %v611_v33  ;;  %v622_v44 = vmul.u32 %v944_v57, %v568_v40  ;;  %v468_v14 = vadd.s32 %v463_v35, %v444_v30  ;;  %vm376_vm9 = vcmp.lt.s32.totalorder %v876_v37, 0 }
  0xdc   :  { %vm624_vm4 = vc.u32 %v599_v36, %v618_v21  ;;  %v470_v23 = vadd.s32 1, %v466_v39  ;;  %v623_v62 = vadd.s32 %v618_v21, %v599_v36  ;;  %vm531_vm10 = vcmp.lt.s32.totalorder %v886_v1, 0 }
  0xdd   :  { %v625_v43 = vadd.s32 1, %v621_v41  ;;  %vm1041_vm11 = vcmp.le.f32.partialorder %v374_v47, 0.7853982  ;;  %vm1047_vm12 = vcmp.le.f32.partialorder %v529_v22, 0.7853982 }
  0xde   :  { %v471_v45 = vsel %vm469_vm3, %v470_v23, %v466_v39  ;;  %vm672_vm3 = vweird.f32 %v886_v1 }
  0xdf   :  { %v626_v48 = vsel %vm624_vm4, %v625_v43, %v621_v41  ;;  %v472_v50 = vadd.s32 %v471_v45, %v467_v42  ;;  %vm687_vm4 = vcmask 1041408  }
  0xe0   :  { %v627_v60 = vadd.s32 %v626_v48, %v622_v44 }
  0xe1   :  { %v473_v49 = vadd.s32 536870912, %v472_v50 }
  0xe2   :  { %v628_v52 = vadd.s32 536870912, %v627_v60 }
  0xe3   :  { %v474_v51 = vshrl.u32 %v473_v49, 30 }
  0xe4   :  { %v1034_v53 = vshrl.u32 %v628_v52, 30 }
  0xe5   :  { %v475_v59 = vshll.u32 %v474_v51, 30  ;;  %v498_v21 = vsub.s32 4, %v474_v51 }
  0xe6   :  { %v630_v54 = vshll.u32 %v1034_v53, 30  ;;  %v653_v41 = vsub.s32 4, %v1034_v53 }
  0xe7   :  { %v476_v58 = vsub.s32 %v472_v50, %v475_v59  ;;  %v499_v43 = vsel %vm376_vm9, %v498_v21, %v474_v51 }
  0xe8   :  { %v631_v4 = vsub.s32 %v627_v60, %v630_v54  ;;  %v654_v60 = vsel %vm531_vm10, %v653_v41, %v1034_v53  ;;  %v501_v59 = vsel %vm1041_vm11, 0, %v499_v43 }
  0xe9   :  { %vm477_vm5 = vcmp.lt.s32.totalorder %v476_v58, 0  ;;  %v478_v5 = vsub.s32 0, %v476_v58 }
  0xea   :  { %vm632_vm6 = vcmp.lt.s32.totalorder %v631_v4, 0  ;;  %v633_v17 = vsub.s32 0, %v631_v4 }
  0xeb   :  { %v479_v8 = vsel %vm477_vm5, %v478_v5, %v476_v58  ;;  %vm517_vm5 = vweird.f32 %v876_v37 }
  0xec   :  { %v634_v57 = vsel %vm632_vm6, %v633_v17, %v631_v4  ;;  %v480_v10 = vclz %v479_v8 }
  0xed   :  { %v635_v38 = vclz %v634_v57  ;;  %v518_v57 = vadd.s32 3, %v501_v59 }
  0xee   :  { %v710_v11 = vadd.s32 4294967294, %v480_v10 }
  0xef   :  { %v713_v46 = vadd.s32 4294967294, %v635_v38 }
  0xf0   :  { %vm711_vm7 = vcmp.lt.s32.totalorder %v710_v11, 0 }
  0xf1   :  { %vm714_vm8 = vcmp.lt.s32.totalorder %v713_v46, 0  ;;  %v483_v13 = vsel %vm711_vm7, 0, %v710_v11 }
  0xf2   :  { %v638_v55 = vsel %vm714_vm8, 0, %v713_v46  ;;  %v484_v15 = vsub.s32 32, %v483_v13  ;;  %v488_v61 = vsub.s32 4294967266, %v483_v13  ;;  %v485_v18 = vshll.u32 %v476_v58, %v483_v13 }
  0xf3   :  { %v639_v0 = vsub.s32 32, %v638_v55  ;;  %v643_v16 = vsub.s32 4294967266, %v638_v55  ;;  %v640_v63 = vshll.u32 %v631_v4, %v638_v55  ;;  %v656_v4 = vsel %vm1047_vm12, 0, %v654_v60 }
  0xf4   :  { %v486_v19 = vshrl.u32 %v468_v14, %v484_v15  ;;  %v489_v20 = vadd.s32 127, %v488_v61  ;;  %v673_v53 = vadd.s32 3, %v656_v4  ;;  %v519_v61 = vand.u32 3, %v518_v57 }
  0xf5   :  { %v641_v25 = vshrl.u32 %v623_v62, %v639_v0  ;;  %v644_v26 = vadd.s32 127, %v643_v16 }
  0xf6   :  { %v487_v3 = vor.u32 %v486_v19, %v485_v18  ;;  %v490_v56 = vshll.u32 %v489_v20, 23  ;;  %v674_v18 = vand.u32 3, %v673_v53  ;;  %vm520_vm13 = vcmp.lt.s32.totalorder %v519_v61, 2 }
  0xf7   :  { %v642_v6 = vor.u32 %v641_v25, %v640_v63  ;;  %v645_v9 = vshll.u32 %v644_v26, 23  ;;  %vm521_vm14 = vcmp.eq.s32.totalorder %v519_v61, 0  ;;  %vm524_vm15 = vcmp.eq.s32.totalorder %v519_v61, 2 }
  0xf8   :  { %v491_v12 = vor.u32 4788187, %v490_v56  ;;  %v494_v29 = vcvt.s32.f32 %v487_v3  ;;  %vm676_vm0 = vcmp.eq.s32.totalorder %v674_v18, 0  ;;  %vm679_vm1 = vcmp.eq.s32.totalorder %v674_v18, 2 }
  0xf9   :  { %v646_v27 = vor.u32 4788187, %v645_v9  ;;  %v649_v2 = vcvt.s32.f32 %v642_v6  ;;  %vm675_vm2 = vcmp.lt.s32.totalorder %v674_v18, 2 }
  0xfa   :  { %v492_v28 = vand.u32 2147483647, %v491_v12 }
  0xfb   :  { %v647_v30 = vand.u32 2147483647, %v646_v27 }
  0xfc   :  { %v495_v24 = vmul.f32 %v494_v29, %v492_v28 }
  0xfd   :  { %v650_v31 = vmul.f32 %v649_v2, %v647_v30 }
  0xfe   :  { %v496_v32 = vxor.u32 2147483648, %v495_v24 }
  0xff   :  { %v651_v33 = vxor.u32 2147483648, %v650_v31 }
 0x100   :  { %v497_v35 = vsel %vm376_vm9, %v496_v32, %v495_v24 }
 0x101   :  { %v652_v36 = vsel %vm531_vm10, %v651_v33, %v650_v31  ;;  %v500_v39 = vsel %vm1041_vm11, %v876_v37, %v497_v35 }
 0x102   :  { %v655_v47 = vsel %vm1047_vm12, %v886_v1, %v652_v36  ;;  %v502_v40 = vmul.f32 %v500_v39, %v500_v39 }
 0x103   :  { %v657_v23 = vmul.f32 %v655_v47, %v655_v47 }
 0x104   :  { %v503_v22 = vmul.f32 -0.001358992, %v502_v40  ;;  %v510_v42 = vmul.f32 -0.00019511016, %v502_v40 }
 0x105   :  { %v658_v44 = vmul.f32 -0.001358992, %v657_v23  ;;  %v665_v45 = vmul.f32 -0.00019511016, %v657_v23 }
 0x106   :  { %v504_v48 = vadd.f32 0.041655596, %v503_v22  ;;  %v511_v50 = vadd.f32 0.008332121, %v510_v42 }
 0x107   :  { %v659_v49 = vadd.f32 0.041655596, %v658_v44  ;;  %v666_v52 = vadd.f32 0.008332121, %v665_v45 }
 0x108   :  { %v505_v54 = vmul.f32 %v504_v48, %v502_v40  ;;  %v512_v58 = vmul.f32 %v511_v50, %v502_v40 }
 0x109   :  { %v660_v5 = vmul.f32 %v659_v49, %v657_v23  ;;  %v667_v51 = vmul.f32 %v666_v52, %v657_v23 }
 0x10a   :  { %v506_v17 = vadd.f32 -0.4999988, %v505_v54  ;;  %v513_v8 = vadd.f32 -0.16666654, %v512_v58 }
 0x10b   :  { %v661_v10 = vadd.f32 -0.4999988, %v660_v5  ;;  %v668_v38 = vadd.f32 -0.16666654, %v667_v51 }
 0x10c   :  { %v507_v11 = vmul.f32 %v506_v17, %v502_v40  ;;  %v514_v46 = vmul.f32 %v513_v8, %v502_v40 }
 0x10d   :  { %v662_v13 = vmul.f32 %v661_v10, %v657_v23  ;;  %v669_v55 = vmul.f32 %v668_v38, %v657_v23 }
 0x10e   :  { %v508_v14 = vadd.f32 1.0, %v507_v11  ;;  %v515_v15 = vadd.f32 1.0, %v514_v46 }
 0x10f   :  { %v663_v62 = vadd.f32 1.0, %v662_v13  ;;  %v670_v0 = vadd.f32 1.0, %v669_v55 }
 0x110   :  { %v516_v16 = vmul.f32 %v515_v15, %v500_v39  ;;  %v525_v19 = vxor.u32 2147483648, %v508_v14 }
 0x111   :  { %v671_v20 = vmul.f32 %v670_v0, %v655_v47  ;;  %v680_v63 = vxor.u32 2147483648, %v663_v62 }
 0x112   :  { %v522_v25 = vxor.u32 2147483648, %v516_v16  ;;  %v526_v56 = vsel %vm524_vm15, %v525_v19, %v516_v16 }
 0x113   :  { %v677_v26 = vxor.u32 2147483648, %v671_v20  ;;  %v681_v9 = vsel %vm679_vm1, %v680_v63, %v671_v20 }
 0x114   :  { %v523_v3 = vsel %vm521_vm14, %v508_v14, %v522_v25 }
 0x115   :  { %v678_v6 = vsel %vm676_vm0, %v663_v62, %v677_v26  ;;  %v527_v12 = vsel %vm520_vm13, %v523_v3, %v526_v56 }
 0x116   :  { %v682_v27 = vsel %vm675_vm2, %v678_v6, %v681_v9  ;;  %v528_v30 = vsel %vm517_vm5, nan, %v527_v12 }
 0x117   :  { %v683_v28 = vsel %vm672_vm3, nan, %v682_v27 }
 0x118   :  { %v686_v29 = vrot.slane %v683_v28, 6 }
 0x11a   :  { %v688_v2 = vsel %vm687_vm4, %v528_v30, %v686_v29 }
 0x11b   :  { %690 = vst [vmem:[#allocation8] sm:$0xf] %v688_v2 }
 0x11c   :  { %701 = dma.vmem_to_hbm [thread:$0]  %s697_s29, 64, %s699_s6, [#allocation4]  }
 0x11d   :  { %826 = dma.done.wait [#allocation4], 64  }
 0x11e   :  { %827 = vsyncadd [#allocation4], 4294967232 }
 0x11f   :  { %706 = vsyncpa [#allocation3], 1 }
 0x120   :  { %707 = vsyncpa [#allocation6], 1 }
 0x121   :  { %708 = vsyncpa [#allocation4], 1 }

</bundles_post_ra>
